<compile_context>
chip_gen: v5e
topology: v5e:2x2
jax: 0.10.0
libtpu: 0.0.40
codegen_flags: <defaults>
</compile_context>

<pallas_src>
import math
from functools import partial

import jax
import jax.numpy as jnp
from jax import lax
from jax.experimental import pallas as pl
from jax.experimental.pallas import tpu as pltpu

N_COS_EMBEDDING = 64
_VMEM_BUDGET_BYTES = 48 * 1024 * 1024  # conservative for v7x (64 MiB physical VMEM)


def _round_up(x, m):
    return ((x + m - 1) // m) * m


def _quantile_kernel(tau_ref, kpi_ref, w_ref, b_ref, o_ref, *, approximate):
    # tau_ref: (TILE_N, 1) f32
    # kpi_ref: (1, 64) f32   -- pi * [1..64], precomputed in the wrapper
    # w_ref:   (64, P_out) f32
    # b_ref:   (1, P_out) f32
    # o_ref:   (TILE_N, P_out) f32
    tau = tau_ref[...]                                    # (TILE_N, 1)

    # cos(pi * k * tau) -> (TILE_N, 64); phase constant folded outside the kernel.
    cos_emb = jnp.cos(tau * kpi_ref[...])

    # Linear: (TILE_N, 64) @ (64, P_out) + bias  (MXU, f32 accumulate)
    y = jnp.dot(cos_emb, w_ref[...], preferred_element_type=jnp.float32)
    y = y + b_ref[...]

    if approximate:
        # tanh-GELU: transcendental runs on the EUP (idle slot) instead of the
        # ~15-op erf VALU polynomial.  Slightly different numerics vs torch default.
        c = jnp.float32(math.sqrt(2.0 / math.pi))
        o_ref[...] = 0.5 * y * (1.0 + jnp.tanh(c * (y + 0.044715 * (y * y * y))))
    else:
        # Exact GELU (torch.nn.GELU default): 0.5 * y * (1 + erf(y / sqrt(2)))
        inv_sqrt2 = jnp.float32(1.0 / math.sqrt(2.0))
        o_ref[...] = 0.5 * y * (1.0 + lax.erf(y * inv_sqrt2))


def _resident_spec(block_shape, index_map, single_buffer):
    """BlockSpec for grid-invariant (resident) inputs; single-buffer when worthwhile."""
    if single_buffer and hasattr(pl, "Buffered"):
        try:
            return pl.BlockSpec(block_shape, index_map, pipeline_mode=pl.Buffered(1))
        except TypeError:
            pass  # older Pallas: no pipeline_mode kwarg -> default buffering
    return pl.BlockSpec(block_shape, index_map)


def quantile_layer(tau, weight, bias, *, tile_n=None, approximate_gelu=False):
    """tau: (B, Q) f32; weight: (64, P) f32; bias: (P,) f32 -> (B, Q, P) f32."""
    B, Q = tau.shape
    P = weight.shape[1]
    N = B * Q

    # ---- output column layout ------------------------------------------------
    # Small P: keep true width (block last dim == full array dim is legal); no dead work.
    # Large P: pad to a lane-dense multiple of 128 (full-width vst).
    P_out = _round_up(P, 128) if P >= 128 else P

    # ---- row tile selection ----------------------------------------------------
    if tile_n is None:
        tile_n = 4096 if P_out <= 256 else (2048 if P_out <= 512 else 1024)
    tile_n = _round_up(max(tile_n, 8), 8)

    # Keep >= 2 row tiles so the "parallel" grid axis can feed both v7x TensorCores.
    tile_n = min(tile_n, max(8, _round_up(pl.cdiv(N, 2), 8)))

    # VMEM cap: double-buffered (out + tau) tiles + resident constants (counted
    # double-buffered, worst case) must fit the budget.
    const_bytes = 2 * 4 * (N_COS_EMBEDDING * P_out + P_out + N_COS_EMBEDDING)

    def _tiles_bytes(t):
        return 2 * 4 * t * (P_out + 1)

    while tile_n > 8 and const_bytes + _tiles_bytes(tile_n) > _VMEM_BUDGET_BYTES:
        tile_n = max(8, _round_up(tile_n // 2, 8))

    N_pad = _round_up(N, tile_n)
    num_tiles = N_pad // tile_n

    # ---- operand preparation ----------------------------------------------------
    tau2d = tau.reshape(N, 1).astype(jnp.float32)
    if N_pad != N:
        tau2d = jnp.pad(tau2d, ((0, N_pad - N), (0, 0)))

    w = weight.astype(jnp.float32)
    b = bias.reshape(1, P).astype(jnp.float32)
    if P_out != P:
        # Zero weight cols + zero bias -> GELU(0) = 0 in padded columns, sliced off later.
        w = jnp.pad(w, ((0, 0), (0, P_out - P)))
        b = jnp.pad(b, ((0, 0), (0, P_out - P)))

    # Phase constant pi * [1..64], shape (1, 64): saves one (TILE_N, 64) VALU mul per tile.
    k_pi = (jnp.float32(math.pi)
            * jnp.arange(1, N_COS_EMBEDDING + 1, dtype=jnp.float32)).reshape(1, -1)

    single_buffer_consts = P_out >= 1024  # only worth shrinking when constants are big
    vmem_need = const_bytes + _tiles_bytes(tile_n) + (2 << 20)
    vmem_limit = int(min(max(vmem_need, 16 << 20), 50 << 20))

    cost = pl.CostEstimate(
        flops=2 * N_pad * N_COS_EMBEDDING * P_out + 4 * N_pad * P_out,
        transcendentals=N_pad * (N_COS_EMBEDDING + P_out),
        bytes_accessed=4 * (N_pad + N_COS_EMBEDDING * P_out + P_out + N_pad * P_out),
    )

    out = pl.pallas_call(
        partial(_quantile_kernel, approximate=approximate_gelu),
        out_shape=jax.ShapeDtypeStruct((N_pad, P_out), jnp.float32),
        grid_spec=pltpu.PrefetchScalarGridSpec(
            num_scalar_prefetch=0,
            grid=(num_tiles,),
            in_specs=[
                pl.BlockSpec((tile_n, 1), lambda i: (i, 0)),                # tau tile
                _resident_spec((1, N_COS_EMBEDDING), lambda i: (0, 0),
                               single_buffer_consts),                       # pi*k (resident)
                _resident_spec((N_COS_EMBEDDING, P_out), lambda i: (0, 0),
                               single_buffer_consts),                       # weight (resident)
                _resident_spec((1, P_out), lambda i: (0, 0),
                               single_buffer_consts),                       # bias (resident)
            ],
            out_specs=pl.BlockSpec((tile_n, P_out), lambda i: (i, 0)),
        ),
        compiler_params=pltpu.CompilerParams(
            dimension_semantics=("parallel",),   # independent row tiles -> megacore shard
            vmem_limit_bytes=vmem_limit,
        ),
        cost_estimate=cost,
    )(tau2d, k_pi, w, b)

    if N_pad != N or P_out != P:
        out = out[:N, :P]
    return out.reshape(B, Q, P)


def _reference(tau, weight, bias):
    # Pure-JAX reference mirroring the PyTorch module semantics (exact GELU).
    emb_range = jnp.arange(1, N_COS_EMBEDDING + 1, dtype=jnp.float32).reshape(1, 1, -1)
    cos_emb = jnp.cos(jnp.float32(math.pi) * emb_range * tau[..., None])
    y = cos_emb @ weight + bias
    return jax.nn.gelu(y, approximate=False)


if __name__ == "__main__":
    key = jax.random.PRNGKey(0)
    k_tau, k_w, k_tau2, k_w2 = jax.random.split(key, 4)

    # ---- case 1: small P (< 128) path, exact tile fit ----------------------------
    B, Q, num_output = 2, 8, 32
    tau = jax.random.uniform(k_tau, (B, Q), dtype=jnp.float32)
    std = 1.0 / math.sqrt(N_COS_EMBEDDING)
    weight = std * jax.random.truncated_normal(
        k_w, -2.0, 2.0, (N_COS_EMBEDDING, num_output), dtype=jnp.float32)
    bias = jnp.zeros((num_output,), dtype=jnp.float32)

    out = jax.block_until_ready(quantile_layer(tau, weight, bias))
    ref = _reference(tau, weight, bias)
    assert out.shape == (B, Q, num_output)
    assert jnp.allclose(out, ref, atol=1e-5, rtol=1e-5)

    # ---- case 2: row padding (odd N) + lane-dense padded P (>= 128, non-multiple) ----
    B2, Q2, num_output2 = 3, 5, 160
    tau2 = jax.random.uniform(k_tau2, (B2, Q2), dtype=jnp.float32)
    weight2 = std * jax.random.truncated_normal(
        k_w2, -2.0, 2.0, (N_COS_EMBEDDING, num_output2), dtype=jnp.float32)
    bias2 = 0.01 * jnp.arange(num_output2, dtype=jnp.float32)

    out2 = jax.block_until_ready(quantile_layer(tau2, weight2, bias2))
    ref2 = _reference(tau2, weight2, bias2)
    assert out2.shape == (B2, Q2, num_output2)
    assert jnp.allclose(out2, ref2, atol=1e-5, rtol=1e-5)

    print("KERNEL_OK")
</pallas_src>

<mosaic_0001>
module attributes {stable_mosaic.version = 11 : i64} {
  func.func @_quantile_kernel(%arg0: i32, %arg1: memref<8x1xf32, #tpu.memory_space<vmem>>, %arg2: memref<1x64xf32, #tpu.memory_space<vmem>>, %arg3: memref<64x32xf32, #tpu.memory_space<vmem>>, %arg4: memref<1x32xf32, #tpu.memory_space<vmem>>, %arg5: memref<8x32xf32, #tpu.memory_space<vmem>>) attributes {dimension_semantics = [#tpu.dimension_semantics<parallel>], iteration_bounds = array<i64: 2>, scalar_prefetch = 0 : i64, scratch_operands = 0 : i64, tpu.core_type = #tpu.core_type<tc>, window_params = [{transform_indices = @transform_0, window_bounds = array<i64: 8, 1>}, {pipeline_mode = #tpu.pipeline_mode<synchronous>, transform_indices = @transform_1, window_bounds = array<i64: 1, 64>}, {pipeline_mode = #tpu.pipeline_mode<synchronous>, transform_indices = @transform_2, window_bounds = array<i64: 64, 32>}, {pipeline_mode = #tpu.pipeline_mode<synchronous>, transform_indices = @transform_3, window_bounds = array<i64: 1, 32>}, {transform_indices = @transform_4, window_bounds = array<i64: 8, 32>}]} {
    %c0 = arith.constant 0 : index
    %c0_0 = arith.constant 0 : index
    %0 = vector.load %arg1[%c0, %c0_0] : memref<8x1xf32, #tpu.memory_space<vmem>>, vector<8x1xf32>
    %c0_1 = arith.constant 0 : index
    %c0_2 = arith.constant 0 : index
    %1 = vector.load %arg2[%c0_1, %c0_2] : memref<1x64xf32, #tpu.memory_space<vmem>>, vector<1x64xf32>
    %2 = vector.broadcast %0 : vector<8x1xf32> to vector<8x64xf32>
    %3 = vector.broadcast %1 : vector<1x64xf32> to vector<8x64xf32>
    %4 = arith.mulf %2, %3 : vector<8x64xf32>
    %5 = math.cos %4 : vector<8x64xf32>
    %c0_3 = arith.constant 0 : index
    %c0_4 = arith.constant 0 : index
    %6 = vector.load %arg3[%c0_3, %c0_4] : memref<64x32xf32, #tpu.memory_space<vmem>>, vector<64x32xf32>
    %cst = arith.constant dense<0.000000e+00> : vector<8x32xf32>
    %7 = tpu.matmul %5, %6, %cst {dimension_numbers = #tpu.dot_dimension_numbers<[1], [0], [0], [1], [0, 0, 1, 1], [], []>} : vector<8x64xf32>, vector<64x32xf32>, vector<8x32xf32> -> vector<8x32xf32>
    %c0_5 = arith.constant 0 : index
    %c0_6 = arith.constant 0 : index
    %8 = vector.load %arg4[%c0_5, %c0_6] : memref<1x32xf32, #tpu.memory_space<vmem>>, vector<1x32xf32>
    %9 = vector.broadcast %8 : vector<1x32xf32> to vector<8x32xf32>
    %10 = arith.addf %7, %9 : vector<8x32xf32>
    %cst_7 = arith.constant 5.000000e-01 : f32
    %11 = vector.broadcast %cst_7 : f32 to vector<8x32xf32>
    %12 = arith.mulf %11, %10 : vector<8x32xf32>
    %cst_8 = arith.constant 0.707106769 : f32
    %13 = vector.broadcast %cst_8 : f32 to vector<8x32xf32>
    %14 = arith.mulf %10, %13 : vector<8x32xf32>
    %15 = math.erf %14 : vector<8x32xf32>
    %cst_9 = arith.constant 1.000000e+00 : f32
    %16 = vector.broadcast %cst_9 : f32 to vector<8x32xf32>
    %17 = arith.addf %16, %15 : vector<8x32xf32>
    %18 = arith.mulf %12, %17 : vector<8x32xf32>
    %c0_10 = arith.constant 0 : index
    %c0_11 = arith.constant 0 : index
    %19 = vector.load %arg5[%c0_10, %c0_11] : memref<8x32xf32, #tpu.memory_space<vmem>>, vector<8x32xf32>
    tpu.vector_store %arg5[%c0_10, %c0_11], %18 {strides = array<i32>} : memref<8x32xf32, #tpu.memory_space<vmem>>, vector<8x32xf32>,
    return
  }
  func.func @transform_0(%arg0: i32) -> (i32, i32) {
    %c0_i32 = arith.constant 0 : i32
    %c0_i32_0 = arith.constant 0 : i32
    return %arg0, %c0_i32 : i32, i32
  }
  func.func @transform_1(%arg0: i32) -> (i32, i32) {
    %c0_i32 = arith.constant 0 : i32
    %c0_i32_0 = arith.constant 0 : i32
    %c0_i32_1 = arith.constant 0 : i32
    return %c0_i32, %c0_i32_0 : i32, i32
  }
  func.func @transform_2(%arg0: i32) -> (i32, i32) {
    %c0_i32 = arith.constant 0 : i32
    %c0_i32_0 = arith.constant 0 : i32
    %c0_i32_1 = arith.constant 0 : i32
    return %c0_i32, %c0_i32_0 : i32, i32
  }
  func.func @transform_3(%arg0: i32) -> (i32, i32) {
    %c0_i32 = arith.constant 0 : i32
    %c0_i32_0 = arith.constant 0 : i32
    %c0_i32_1 = arith.constant 0 : i32
    return %c0_i32, %c0_i32_0 : i32, i32
  }
  func.func @transform_4(%arg0: i32) -> (i32, i32) {
    %c0_i32 = arith.constant 0 : i32
    %c0_i32_0 = arith.constant 0 : i32
    return %arg0, %c0_i32 : i32, i32
  }
}

</mosaic_0001>

<bundles_post_ra>
// kernel: tpu_custom_call.1
= control target key start
LH: loop header
LB: loop body
LE: loop exit
PB: predicated region body
PF: predicated region fallthrough
CT: control target
= control target key end

     0   :  { %9 = vsyncpa [#allocation3], 0  ;;  %s859_s0 = inlined_call_operand.vmem [shape: f32[16,1], index: 0, kind: input, shape index: {}]   ;;  %s860_s1 = inlined_call_operand.vmem [shape: f32[1,64], index: 1, kind: input, shape index: {}]   ;;  %s861_s2 = inlined_call_operand.vmem [shape: f32[64,32], index: 2, kind: input, shape index: {}]   ;;  %s862_s3 = inlined_call_operand.vmem [shape: f32[1,32], index: 3, kind: input, shape index: {}]   ;;  %s863_s4 = inlined_call_operand.hbm [shape: f32[16,32], index: 4, kind: output, shape index: {}]  }
   0x1   :  { %11 = vsyncpa [#allocation3 + $0x1], 0  ;;  %s677_s15 = smov 0   ;;  %s679_s16 = smov 0  }
   0x2   :  { %s681_s17 = smov 0   ;;  %s683_s18 = smov 0  }
   0x3 LB: > { %s698_s19 = sadd.s32 4294967295, %s643_s18   ;;  %s515_s20 = sadd.s32 4294967294, %s643_s18   ;;  %s643_s18 = sphi %s683_s18, %s871_s18   ;;  %s639_s17 = sphi %s681_s17, %s870_s17   ;;  %s635_s16 = sphi %s679_s16, %s869_s16   ;;  %s631_s15 = sphi %s677_s15, %s868_s15  }
   0x4   : > { %s702_s21 = sadd.s32 1, %s643_s18   ;;  %s113_s22 = sadd.s32 1, %s639_s17 }
   0x5   : > { %s110_s23 = ssub.s32 %s643_s18, %s702_s21  ;;  %p123_p0 = scmp.ne.s32.totalorder %s639_s17, %s635_s16 }
   0x6   : > { %p111_p1 = scmp.eq.s32.totalorder %s110_s23, 0  ;;  %p124_p2 = scmp.eq.s32.totalorder %s698_s19, 1 }
   0x7   : > { %p129_p3 = scmp.ne.s32.totalorder %s635_s16, %s631_s15  ;;  %p130_p4 = scmp.eq.s32.totalorder %s515_s20, 1 }
   0x8   : > { %s713_s24 = scalar_select %p111_p1, %s639_s17, %s113_s22  }
   0x9   : > { %p715_p5 = por %p124_p2, %p123_p0  ;;  %p719_p6 = por %p130_p4, %p129_p3 }
   0xa   : > { %p518_p7 = scmp.ge.s32.totalorder %s643_s18, 1  ;;  %p164_p8 = scmp.lt.s32.totalorder %s643_s18, 3 }
   0xc   : > { %p165_p9 = pnand %p518_p7, %p164_p8 }
   0xd   : > { %p189_p10 = scmp.lt.s32.totalorder (!%p165_p9), %s698_s19, 1  ;;  %s186_s9 = sand.u32 (!%p165_p9), 1, %s635_s16  }
   0xe   : > { %168 = sbr.rel (%p165_p9) target bundleno = 419 (0x1a3), region = 36  ;;  %s519_s10 = sshll.u32 (!%p165_p9), %s186_s9, 3 }
   0xf   : > { %s527_s11 = sshll.u32 (!%p165_p9), %s698_s19, 3  ;;  %s188_s20 = scalar_lea.vmem (!%p165_p9), [#allocation2], %s519_s10 }
  0x10   : > { %s451_s14 = scalar_lea.hbm (!%p165_p9), %s863_s4, %s527_s11  ;;  %s453_s22 = sshll.u32 (!%p165_p9), %s188_s20, 4  ;;  %s454_s22 = int_to_ptr.vmem [resolvable:$true] %s453_s22 }
  0x11   : > { %s455_s23 = sshll.u32 (!%p165_p9), %s451_s14, 4  ;;  %s456_s23 = int_to_ptr.hbm [resolvable:$true] %s455_s23 }
  0x13   : > { %v645_v0 = vmov 0   ;;  %s190_s27 = scalar_select %p189_p10, %s698_s19, 1  ;;  %v365_v2 = vld [vmem:[%s861_s2 + $0x38] sm:$0xff]  ;;  %v364_v3 = vld [vmem:[%s861_s2 + $0x30] sm:$0xff]  ;;  %v363_v4 = vld [vmem:[%s861_s2 + $0x28] sm:$0xff] }
  0x14   : > { %576 = vset.pattern.permute.xlu0 %v645_v0  ;;  %382 = vmatpush.msra.mxu0 %v365_v2  ;;  %v362_v5 = vld [vmem:[%s861_s2 + $0x20] sm:$0xff]  ;;  %v361_v6 = vld [vmem:[%s861_s2 + $0x18] sm:$0xff]  ;;  %v360_v8 = vld [vmem:[%s861_s2 + $0x10] sm:$0xff]  ;;  %v646_v24 = vmov 2102212464   ;;  %s441_s19 = scalar_lea.sflag [#allocation3], %s186_s9 }
  0x15   : > { %s520_s28 = sshll.u32 %s190_s27, 3  ;;  %v577_v7 = vld [vmem:[%s860_s1] ss:$0 sm:$0xff]  ;;  %v359_v9 = vld [vmem:[%s861_s2 + $0x8] sm:$0xff]  ;;  %v647_v26 = vmov 920167782  }
  0x16   : > { %s192_s5 = scalar_lea.vmem %s859_s0, %s520_s28  ;;  %383 = vmatpush.msra.mxu0 %v364_v3  ;;  %v358_v12 = vld [vmem:[%s861_s2] sm:$0xff]  ;;  %v648_v29 = vmov 1326507024   ;;  %v649_v31 = vmov 683565275   ;;  %s595_s27 = sshra.s32 %s456_s23, 4  ;;  %s596_s27 = int_to_ptr.hbm [resolvable:$true] %s595_s27 }
  0x17   : > { %v193_v1 = vld [vmem:[%s192_s5] sm:$0xff]  ;;  %v650_v33 = vmov 2475754826   ;;  %v651_v36 = vmov 2131351028   ;;  %s597_s28 = scalar_lea.hbm %s596_s27, 8  ;;  %p602_p0 = scmp.lt.s32.totalorder %s596_s27, %s863_s4 }
  0x18   : > { %197 = vperm.xlu0 %576, %v193_v1   ;;  %384 = vmatpush.msra.mxu0 %v363_v4  ;;  %p598_p11 = scmp.ne.s32.totalorder %s596_s27, %s597_s28  ;;  %s601_s5 = scalar_lea.hbm %s863_s4, 16 }
  0x19   : > { %p603_p1 = scmp.lt.s32.totalorder %s601_s5, %s597_s28 }
  0x1a   : > { %385 = vmatpush.msra.mxu0 %v362_v5  ;;  %p599_p12 = pnand %p598_p11, %p715_p5 }
  0x1b   : > { %p604_p2 = por %p603_p1, %p602_p0 }
  0x1c   : > { %386 = vmatpush.msra.mxu0 %v361_v6  ;;  %p600_p13 = pneg %p599_p12 }
  0x1e   : > { %387 = vmatpush.msra.mxu0 %v360_v8  ;;  %p605_p3 = pnand %p604_p2, %p600_p13 }
  0x20   : > { %388 = vmatpush.msra.mxu0 %v359_v9 }
  0x22   : > { %389 = vmatpush.msra.mxu0 %v358_v12 }
  0x8a   : > { %v198_v10 = vpop.permute.xlu0 %197 }
  0x8b   : > { %v755_v11 = vmul.f32 %v577_v7, %v198_v10 }
  0x8d   : > { %v207_v13 = vand.u32 2139095040, %v755_v11  ;;  %v204_v16 = vand.u32 2147483647, %v755_v11  ;;  %vm206_vm12 = vcmp.lt.s32.totalorder %v755_v11, 0 }
  0x8f   : > { %v208_v14 = vshrl.u32 %v207_v13, 23  ;;  %v211_v18 = vand.u32 8388607, %v204_v16  ;;  %vm814_vm13 = vcmp.le.f32.partialorder %v204_v16, 0.7853982 }
  0x91   : > { %v521_v15 = vadd.s32 4294967169, %v208_v14  ;;  %v212_v22 = vor.u32 8388608, %v211_v18 }
  0x93   : > { %v214_v17 = vadd.s32 1, %v521_v15  ;;  %v773_v43 = vshll.u32 %v212_v22, 8 }
  0x95   : > { %vm215_vm0 = vcmp.gt.s32.totalorder %v214_v17, 0  ;;  %v253_v53 = vand.u32 65535, %v773_v43  ;;  %v254_v55 = vshrl.u32 %v773_v43, 16 }
  0x96   : > { %v216_v19 = vsel %vm215_vm0, %v214_v17, 0 }
  0x97   : > { %v218_v20 = vand.u32 31, %v216_v19  ;;  %v766_v23 = vshrl.u32 %v216_v19, 5 }
  0x99   : > { %v764_v21 = vsub.s32 32, %v218_v20  ;;  %v230_v25 = vshll.u32 %v646_v24, %v218_v20  ;;  %v233_v27 = vshll.u32 %v647_v26, %v218_v20  ;;  %v221_v32 = vshll.u32 %v649_v31, %v218_v20 }
  0x9a   : > { %v224_v35 = vshll.u32 %v650_v33, %v218_v20  ;;  %v227_v38 = vshll.u32 %v651_v36, %v218_v20  ;;  %vm239_vm1 = vcmp.lt.s32.totalorder %v766_v23, 4  ;;  %vm236_vm2 = vcmp.lt.s32.totalorder %v766_v23, 1 }
  0x9b   : > { %v231_v28 = vshrl.u32 %v647_v26, %v764_v21  ;;  %v234_v30 = vshrl.u32 %v648_v29, %v764_v21  ;;  %v222_v34 = vshrl.u32 %v650_v33, %v764_v21  ;;  %v225_v37 = vshrl.u32 %v651_v36, %v764_v21 }
  0x9c   : > { %v228_v39 = vshrl.u32 %v646_v24, %v764_v21  ;;  %vm238_vm3 = vcmp.lt.s32.totalorder %v766_v23, 3  ;;  %vm237_vm4 = vcmp.lt.s32.totalorder %v766_v23, 2  ;;  %v220_v17 = vshrl.u32 %v649_v31, %v764_v21 }
  0x9d   : > { %v232_v40 = vor.u32 %v231_v28, %v230_v25  ;;  %v235_v41 = vor.u32 %v234_v30, %v233_v27  ;;  %v223_v42 = vor.u32 %v222_v34, %v221_v32  ;;  %v226_v44 = vor.u32 %v225_v37, %v224_v35 }
  0x9e   : > { %v229_v45 = vor.u32 %v228_v39, %v227_v38 }
  0x9f   : > { %v245_v46 = vsel %vm239_vm1, %v232_v40, 920167782  ;;  %v249_v47 = vsel %vm239_vm1, %v235_v41, 1326507024  ;;  %v244_v48 = vsel %vm236_vm2, %v223_v42, %v226_v44  ;;  %v240_v25 = vsel %vm236_vm2, %v220_v17, %v223_v42 }
  0xa0   : > { %v246_v49 = vsel %vm238_vm3, %v229_v45, %v245_v46  ;;  %v248_v50 = vsel %vm236_vm2, %v226_v44, %v229_v45  ;;  %v250_v52 = vsel %vm238_vm3, %v232_v40, %v249_v47  ;;  %v241_v13 = vsel %vm239_vm1, %v229_v45, 2102212464 }
  0xa1   : > { %v247_v51 = vsel %vm237_vm4, %v244_v48, %v246_v49  ;;  %v251_v54 = vsel %vm237_vm4, %v248_v50, %v250_v52  ;;  %v242_v26 = vsel %vm238_vm3, %v226_v44, %v241_v13  ;;  %vm370_vm1 = vcmask 523264  }
  0xa2   : > { %v277_v56 = vand.u32 65535, %v247_v51  ;;  %v278_v57 = vshrl.u32 %v247_v51, 16  ;;  %v255_v58 = vand.u32 65535, %v251_v54  ;;  %v256_v59 = vshrl.u32 %v251_v54, 16 }
  0xa3   : > { %v243_v31 = vsel %vm237_vm4, %v240_v25, %v242_v26  ;;  %vm347_vm2 = vweird.f32 %v755_v11 }
  0xa4   : > { %v280_v60 = vmul.u32 %v278_v57, %v253_v53  ;;  %v281_v61 = vmul.u32 %v277_v56, %v254_v55  ;;  %v258_v62 = vmul.u32 %v256_v59, %v253_v53  ;;  %v259_v63 = vmul.u32 %v255_v58, %v254_v55 }
  0xa5   : > { %v279_v1 = vmul.u32 %v277_v56, %v253_v53  ;;  %v257_v3 = vmul.u32 %v255_v58, %v253_v53  ;;  %v282_v5 = vmul.u32 %v278_v57, %v254_v55  ;;  %v260_v6 = vmul.u32 %v256_v59, %v254_v55 }
  0xa6   : > { %v283_v2 = vshll.u32 %v280_v60, 16  ;;  %v261_v4 = vshll.u32 %v258_v62, 16  ;;  %v285_v7 = vshll.u32 %v281_v61, 16  ;;  %v263_v9 = vshll.u32 %v259_v63, 16 }
  0xa7   : > { %v284_v22 = vshrl.u32 %v280_v60, 16  ;;  %v262_v27 = vshrl.u32 %v258_v62, 16  ;;  %v286_v29 = vshrl.u32 %v281_v61, 16  ;;  %v264_v32 = vshrl.u32 %v259_v63, 16 }
  0xa8   : > { %vm287_vm5 = vc.u32 %v279_v1, %v283_v2  ;;  %v289_v8 = vadd.s32 %v283_v2, %v279_v1  ;;  %vm265_vm6 = vc.u32 %v257_v3, %v261_v4  ;;  %v267_v10 = vadd.s32 %v261_v4, %v257_v3 }
  0xa9   : > { %v288_v12 = vsel %vm287_vm5, 1, %v645_v0  ;;  %v266_v14 = vsel %vm265_vm6, 1, %v645_v0  ;;  %v297_v36 = vmul.u32 %v773_v43, %v243_v31 }
  0xaa   : > { %v290_v15 = vadd.s32 %v288_v12, %v282_v5  ;;  %vm291_vm7 = vc.u32 %v289_v8, %v285_v7  ;;  %v268_v18 = vadd.s32 %v266_v14, %v260_v6  ;;  %vm269_vm8 = vc.u32 %v267_v10, %v263_v9 }
  0xab   : > { %v292_v19 = vsel %vm291_vm7, 1, %v645_v0  ;;  %v270_v20 = vsel %vm269_vm8, 1, %v645_v0  ;;  %v293_v0 = vadd.s32 %v289_v8, %v285_v7  ;;  %vm438_vm7 = vcmask 261120  }
  0xac   : > { %v294_v24 = vadd.s32 %v292_v19, %v290_v15  ;;  %v272_v28 = vadd.s32 %v270_v20, %v268_v18 }
  0xae   : > { %v295_v30 = vadd.s32 %v294_v24, %v284_v22  ;;  %v273_v21 = vadd.s32 %v272_v28, %v262_v27  ;;  %v578_v27 = vld [vmem:[%s862_s3] ss:$0 sm:$0xff] }
  0xb0   : > { %v296_v33 = vadd.s32 %v295_v30, %v286_v29  ;;  %v274_v34 = vadd.s32 %v273_v21, %v264_v32 }
  0xb2   : > { %v300_v35 = vadd.s32 1, %v296_v33  ;;  %vm299_vm9 = vc.u32 %v274_v34, %v293_v0  ;;  %v298_v48 = vadd.s32 %v293_v0, %v274_v34 }
  0xb4   : > { %v301_v37 = vsel %vm299_vm9, %v300_v35, %v296_v33 }
  0xb5   : > { %v302_v38 = vadd.s32 %v301_v37, %v297_v36 }
  0xb7   : > { %v303_v39 = vadd.s32 536870912, %v302_v38 }
  0xb9   : > { %v304_v40 = vshrl.u32 %v303_v39, 30 }
  0xbb   : > { %v305_v41 = vshll.u32 %v304_v40, 30  ;;  %v328_v3 = vsub.s32 4, %v304_v40 }
  0xbd   : > { %v306_v42 = vsub.s32 %v302_v38, %v305_v41  ;;  %v329_v8 = vsel %vm206_vm12, %v328_v3, %v304_v40 }
  0xbe   : > { %v331_v16 = vsel %vm814_vm13, 0, %v329_v8 }
  0xbf   : > { %vm307_vm10 = vcmp.lt.s32.totalorder %v306_v42, 0  ;;  %v308_v44 = vsub.s32 0, %v306_v42  ;;  %v348_v17 = vand.u32 3, %v331_v16 }
  0xc1   : > { %v309_v45 = vsel %vm307_vm10, %v308_v44, %v306_v42  ;;  %vm350_vm14 = vcmp.eq.s32.totalorder %v348_v17, 0  ;;  %vm353_vm15 = vcmp.eq.s32.totalorder %v348_v17, 2  ;;  %vm349_vm0 = vcmp.lt.s32.totalorder %v348_v17, 2 }
  0xc2   : > { %v310_v46 = vclz %v309_v45 }
  0xc4   : > { %v522_v47 = vadd.s32 4294967294, %v310_v46 }
  0xc6   : > { %vm523_vm11 = vcmp.lt.s32.totalorder %v522_v47, 0 }
  0xc7   : > { %v313_v23 = vsel %vm523_vm11, 0, %v522_v47 }
  0xc8   : > { %v314_v49 = vsub.s32 32, %v313_v23  ;;  %v318_v50 = vsub.s32 4294967266, %v313_v23  ;;  %v315_v51 = vshll.u32 %v306_v42, %v313_v23 }
  0xca   : > { %v316_v52 = vshrl.u32 %v298_v48, %v314_v49  ;;  %v319_v43 = vadd.s32 127, %v318_v50 }
  0xcc   : > { %v317_v53 = vor.u32 %v316_v52, %v315_v51  ;;  %v320_v54 = vshll.u32 %v319_v43, 23 }
  0xce   : > { %v321_v55 = vor.u32 4788187, %v320_v54  ;;  %v324_v57 = vcvt.s32.f32 %v317_v53 }
  0xd0   : > { %v322_v56 = vand.u32 2147483647, %v321_v55 }
  0xd2   : > { %v325_v58 = vmul.f32 %v324_v57, %v322_v56 }
  0xd4   : > { %v326_v59 = vxor.u32 2147483648, %v325_v58 }
  0xd6   : > { %v327_v61 = vsel %vm206_vm12, %v326_v59, %v325_v58 }
  0xd7   : > { %v330_v62 = vsel %vm814_vm13, %v755_v11, %v327_v61 }
  0xd8   : > { %v332_v63 = vmul.f32 %v330_v62, %v330_v62 }
  0xda   : > { %v333_v1 = vmul.f32 -0.001358992, %v332_v63  ;;  %v340_v2 = vmul.f32 -0.00019511016, %v332_v63 }
  0xdc   : > { %v334_v4 = vadd.f32 0.041655596, %v333_v1  ;;  %v341_v5 = vadd.f32 0.008332121, %v340_v2 }
  0xde   : > { %v335_v6 = vmul.f32 %v334_v4, %v332_v63  ;;  %v342_v7 = vmul.f32 %v341_v5, %v332_v63 }
  0xe0   : > { %v336_v9 = vadd.f32 -0.4999988, %v335_v6  ;;  %v343_v10 = vadd.f32 -0.16666654, %v342_v7 }
  0xe2   : > { %v337_v12 = vmul.f32 %v336_v9, %v332_v63  ;;  %v344_v13 = vmul.f32 %v343_v10, %v332_v63 }
  0xe4   : > { %v338_v14 = vadd.f32 1.0, %v337_v12  ;;  %v345_v15 = vadd.f32 1.0, %v344_v13 }
  0xe6   : > { %v346_v18 = vmul.f32 %v345_v15, %v330_v62  ;;  %v354_v19 = vxor.u32 2147483648, %v338_v14 }
  0xe8   : > { %v351_v20 = vxor.u32 2147483648, %v346_v18  ;;  %v355_v24 = vsel %vm353_vm15, %v354_v19, %v346_v18 }
  0xea   : > { %v352_v22 = vsel %vm350_vm14, %v338_v14, %v351_v20 }
  0xeb   : > { %v356_v25 = vsel %vm349_vm0, %v352_v22, %v355_v24 }
  0xec   : > { %v357_v26 = vsel %vm347_vm2, nan, %v356_v25 }
  0xed   : > { %524 = vmatmul.msk.f32.vlgmr.msra.gmra.mxu0 %vm370_vm1, %v357_v26 }
 0x16a   : > { %v391_v28 = vpop.f32.mrf.mxu0 }
 0x16b   : > { %v392_v29 = vadd.f32 %v578_v27, %v391_v28 }
 0x16d   : > { %v395_v30 = vmul.f32 0.70710677, %v392_v29  ;;  %v394_v62 = vmul.f32 0.5, %v392_v29 }
 0x16f   : > { %v396_v32 = vmul.f32 %v395_v30, %v395_v30 }
 0x171   : > { %v397_v21 = vmin.f32 %v396_v32, 16.0 }
 0x173   : > { %v398_v31 = vmul.f32 2.1237322e-06, %v397_v21  ;;  %v409_v33 = vmul.f32 3.8918573e-05, %v397_v21 }
 0x175   : > { %v399_v34 = vadd.f32 0.00028619796, %v398_v31  ;;  %v410_v0 = vadd.f32 0.001143296, %v409_v33 }
 0x177   : > { %v400_v35 = vmul.f32 %v399_v34, %v397_v21  ;;  %v411_v36 = vmul.f32 %v410_v0, %v397_v21 }
 0x179   : > { %v412_v37 = vadd.f32 0.014752088, %v411_v36  ;;  %v401_v11 = vadd.f32 0.0036580483, %v400_v35 }
 0x17b   : > { %v413_v38 = vmul.f32 %v412_v37, %v397_v21  ;;  %v402_v40 = vmul.f32 %v401_v11, %v397_v21 }
 0x17d   : > { %v414_v39 = vadd.f32 0.112945676, %v413_v38  ;;  %v403_v44 = vadd.f32 0.05243302, %v402_v40 }
 0x17f   : > { %v415_v41 = vmul.f32 %v414_v39, %v397_v21  ;;  %v404_v47 = vmul.f32 %v403_v44, %v397_v21 }
 0x181   : > { %v416_v42 = vadd.f32 0.4994258, %v415_v41  ;;  %v405_v23 = vadd.f32 0.18741608, %v404_v47 }
 0x183   : > { %v417_v45 = vmul.f32 %v416_v42, %v397_v21  ;;  %v406_v49 = vmul.f32 %v405_v23, %v397_v21 }
 0x185   : > { %v418_v46 = vadd.f32 1.0, %v417_v45  ;;  %v407_v43 = vadd.f32 1.1283791, %v406_v49 }
 0x187   : > { %579 = vrcp.f32 %v418_v46  ;;  %v430_v52 = vand.u32 2147483648, %v418_v46  ;;  %v428_v54 = vand.u32 2147483647, %v418_v46  ;;  %vm424_vm4 = vweird.f32 %v418_v46 }
 0x188   : > { %v408_v57 = vmul.f32 %v407_v43, %v395_v30 }
 0x189   : > { %v431_v56 = vor.u32 1.1754944e-38, %v430_v52  ;;  %vm429_vm6 = vcmp.eq.f32.partialorder %v428_v54, 8.507059e+37 }
 0x18d   : > { %v580_v48 = vpop.eup %579 }
 0x18e   : > { %v420_v50 = vmul.f32 %v580_v48, %v418_v46  ;;  %vm425_vm3 = vweird.f32 %v580_v48 }
 0x18f   : > { %vm426_vm5 = vmor %vm424_vm4, %vm425_vm3 }
 0x190   : > { %v421_v51 = vsub.f32 1.0, %v420_v50 }
 0x192   : > { %v422_v53 = vmul.f32 %v580_v48, %v421_v51 }
 0x194   : > { %v423_v55 = vadd.f32 %v580_v48, %v422_v53 }
 0x196   : > { %v427_v58 = vsel %vm426_vm5, %v580_v48, %v423_v55 }
 0x197   : > { %v432_v59 = vsel %vm429_vm6, %v431_v56, %v427_v58 }
 0x198   : > { %v433_v60 = vmul.f32 %v432_v59, %v408_v57 }
 0x19a   : > { %v525_v61 = vclamps-f32 %v433_v60, 1.0 }
 0x19c   : > { %v436_v63 = vadd.f32 1.0, %v525_v61 }
 0x19e   : > { %v437_v1 = vmul.f32 %v436_v63, %v394_v62 }
 0x1a0   : > { %439 = vst.msk [vmem:[%s188_s20] sm:$0xff] %vm438_vm7, %v437_v1 }
 0x1a1   : > { %608 = shalt.err (!%p605_p3)
}
 0x1a2   : > { %530 = dma.vmem_to_hbm [thread:$0]  (%p715_p5), %s454_s22, 128, %s456_s23, %s441_s19  }
 0x1a3 PF: > { %p536_p4 = scmp.ge.s32.totalorder %s643_s18, 2  ;;  %s467_s8 = sand.u32 1, %s631_s15  }
 0x1a4   : > { %s468_s9 = scalar_lea.sflag [#allocation3], %s467_s8 }
 0x1a5   : > { %p533_p7 = pnand %p536_p4, %p719_p6 }
 0x1a7   : > { %p534_p8 = pneg %p533_p7 }
 0x1a9   : > { %626 = dma.done.wait (%p534_p8), %s468_s9, 128  }
 0x1aa   : > { %628 = vsyncadd (%p534_p8), %s468_s9, 4294967168  ;;  %p14_p9 = scmp.ge.s32.totalorder %s702_s21, 4   ;;  %s868_s15 = smov %s635_s16 }
 0x1ab   : > { %s869_s16 = smov %s639_s17  ;;  %s870_s17 = smov %s713_s24 }
 0x1ac   : > { %s871_s18 = smov %s702_s21  ;;  %16 = sbr.rel (!%p14_p9) target bundleno = 3 (0x3), region = 71 }
 0x1b1   :  { %474 = vsyncpa [#allocation3], 1 }
 0x1b2   :  { %476 = vsyncpa [#allocation3 + $0x1], 1 }

</bundles_post_ra>
